<compile_context>
chip_gen: v5e
topology: v5e:2x2
jax: 0.10.0
libtpu: 0.0.40
codegen_flags: <defaults>
</compile_context>

<pallas_src>
import functools

import jax
import jax.numpy as jnp
from jax.experimental import pallas as pl
from jax.experimental.pallas import tpu as pltpu


def _feature_cls_loss_kernel(x_ref, w_ref, labels_ref, loss_ref, *, n_valid):
    # x_ref:      (TILE_N, D) f32  -- one row-tile of the batch
    # w_ref:      (C, D)      f32  -- torch Linear weight layout, resident in VMEM
    # labels_ref: (1, TILE_N) i32  -- lane-major class ids for this tile
    # loss_ref:   (1, TILE_N) f32  -- per-example CE loss (0 for padded rows)
    i = pl.program_id(0)
    x = x_ref[...]
    w = w_ref[...]
    tile_n = x.shape[0]
    c = w.shape[0]

    # (x / ||x||) @ W^T == (x @ W^T) * (1/||x||): contract on D directly against the
    # torch-layout weight (no host transpose) and scale the N*C logits with an EUP
    # rsqrt instead of dividing the N*D inputs on the VPU.
    inv_norm = jax.lax.rsqrt(jnp.sum(x * x, axis=1, keepdims=True))        # (T, 1)
    logits = jax.lax.dot_general(
        x, w,
        dimension_numbers=(((1,), (1,)), ((), ())),
        preferred_element_type=jnp.float32) * inv_norm                      # (T, C)

    # log-sum-exp over classes
    m = jnp.max(logits, axis=1, keepdims=True)                              # (T, 1)
    lse = m + jnp.log(jnp.sum(jnp.exp(logits - m), axis=1, keepdims=True))  # (T, 1)

    # Gather the label logit with a select (no one-hot multiply / int->f32 cast).
    labels_col = jnp.transpose(labels_ref[...])                             # (T, 1)
    class_ids = jax.lax.broadcasted_iota(jnp.int32, (tile_n, c), 1)         # (T, C)
    label_logit = jnp.sum(
        jnp.where(class_ids == labels_col, logits, 0.0),
        axis=1, keepdims=True)                                              # (T, 1)

    per_example = jnp.transpose(lse - label_logit)                          # (1, T)

    # Zero out padded rows so the wrapper can do sum / true_N.
    col = jax.lax.broadcasted_iota(jnp.int32, (1, tile_n), 1)
    valid = (i * tile_n + col) < n_valid
    loss_ref[...] = jnp.where(valid, per_example, 0.0)


def _round_up(v, m):
    return ((v + m - 1) // m) * m


def _choose_tile_n(n, d, c, vmem_budget_bytes=16 * 1024 * 1024):
    """Largest lane-friendly row tile whose double-buffered working set fits a
    conservative VMEM budget (sized against v7x's 64 MiB physical / 32 MiB
    default-scoped VMEM; also safe on v5e/v6e). Small batches use one 8-row-aligned
    tile (single grid step)."""
    if n <= 128:
        return _round_up(max(n, 1), 8)
    best = 128
    for t in (256, 512, 1024, 2048):
        need = (2 * t * d * 4      # double-buffered x tile
                + 2 * c * d * 4    # weight (resident, but budget both buffers)
                + t * c * 4        # logits
                + 4 * t * 4)       # labels (i32) + per-example loss (f32), dbuf
        if t <= n and need <= vmem_budget_bytes:
            best = t
    return best


def feature_classification_loss(x, weight, labels):
    """x: (N, D) f32, weight: (C, D) f32 (torch Linear layout, NOT transposed),
    labels: (N,) int. Returns scalar mean cross-entropy loss."""
    n, d = x.shape
    c = weight.shape[0]

    tile_n = _choose_tile_n(n, d, c)
    num_tiles = pl.cdiv(n, tile_n)
    n_pad = num_tiles * tile_n

    # Zero-pad the batch to whole tiles (no-op when already aligned); padded rows
    # are masked out inside the kernel and the mean divides by the true N.
    x_p = jnp.pad(x, ((0, n_pad - n), (0, 0)))
    labels_p = jnp.pad(labels.astype(jnp.int32), (0, n_pad - n)).reshape(1, n_pad)

    vmem_need = (2 * tile_n * d * 4 + 2 * c * d * 4
                 + tile_n * c * 4 + 4 * tile_n * 4)
    vmem_limit = int(min(max(4 * vmem_need, 16 << 20), 64 << 20))

    per_example = pl.pallas_call(
        functools.partial(_feature_cls_loss_kernel, n_valid=n),
        out_shape=jax.ShapeDtypeStruct((1, n_pad), jnp.float32),
        grid_spec=pltpu.PrefetchScalarGridSpec(
            num_scalar_prefetch=0,
            grid=(num_tiles,),
            in_specs=[
                pl.BlockSpec((tile_n, d), lambda i: (i, 0)),   # x row-tile (dbuf)
                pl.BlockSpec((c, d), lambda i: (0, 0)),        # W resident, torch layout
                pl.BlockSpec((1, tile_n), lambda i: (0, i)),   # labels, lane-major
            ],
            out_specs=pl.BlockSpec((1, tile_n), lambda i: (0, i)),  # lane-dense out
        ),
        compiler_params=pltpu.CompilerParams(
            dimension_semantics=("parallel",),
            vmem_limit_bytes=vmem_limit,
        ),
    )(x_p, weight, labels_p)

    # Padded rows were zeroed in-kernel; mean over the true batch size.
    return jnp.sum(per_example) / n


if __name__ == "__main__":
    key = jax.random.PRNGKey(0)
    k_x, k_w, k_l = jax.random.split(key, 3)

    N = 8             # batch
    IN_FEATURES = 32
    NUM_CLASSES = 16

    x = jax.random.normal(k_x, (N, IN_FEATURES), dtype=jnp.float32)
    # Deterministic Linear weight init (Kaiming-uniform-like bound, fixed seed).
    bound = 1.0 / (IN_FEATURES ** 0.5)
    weight = jax.random.uniform(
        k_w, (NUM_CLASSES, IN_FEATURES), minval=-bound, maxval=bound,
        dtype=jnp.float32)
    labels = jax.random.randint(k_l, (N,), 0, NUM_CLASSES, dtype=jnp.int32)

    loss = feature_classification_loss(x, weight, labels)
    jax.block_until_ready(loss)

    # Pure-JAX reference check
    x_n = x / jnp.linalg.norm(x, axis=1, keepdims=True)
    logits = x_n @ weight.T
    ref = -jnp.mean(
        jax.nn.log_softmax(logits, axis=-1)[jnp.arange(N), labels])
    assert jnp.allclose(loss, ref, atol=1e-5, rtol=1e-5), (loss, ref)

    print("KERNEL_OK")
</pallas_src>

<mosaic_0001>
module attributes {stable_mosaic.version = 11 : i64} {
  func.func @_feature_cls_loss_kernel(%arg0: i32, %arg1: memref<8x32xf32, #tpu.memory_space<vmem>>, %arg2: memref<16x32xf32, #tpu.memory_space<vmem>>, %arg3: memref<1x8xi32, #tpu.memory_space<vmem>>, %arg4: memref<1x8xf32, #tpu.memory_space<vmem>>) attributes {dimension_semantics = [#tpu.dimension_semantics<parallel>], iteration_bounds = array<i64: 1>, scalar_prefetch = 0 : i64, scratch_operands = 0 : i64, tpu.core_type = #tpu.core_type<tc>, window_params = [{transform_indices = @transform_0, window_bounds = array<i64: 8, 32>}, {pipeline_mode = #tpu.pipeline_mode<synchronous>, transform_indices = @transform_1, window_bounds = array<i64: 16, 32>}, {transform_indices = @transform_2, window_bounds = array<i64: 1, 8>}, {transform_indices = @transform_3, window_bounds = array<i64: 1, 8>}]} {
    %c0 = arith.constant 0 : index
    %c0_0 = arith.constant 0 : index
    %0 = vector.load %arg1[%c0, %c0_0] : memref<8x32xf32, #tpu.memory_space<vmem>>, vector<8x32xf32>
    %c0_1 = arith.constant 0 : index
    %c0_2 = arith.constant 0 : index
    %1 = vector.load %arg2[%c0_1, %c0_2] : memref<16x32xf32, #tpu.memory_space<vmem>>, vector<16x32xf32>
    %2 = arith.mulf %0, %0 : vector<8x32xf32>
    %cst = arith.constant dense<0.000000e+00> : vector<8xf32>
    %3 = vector.multi_reduction <add>, %2, %cst [1] : vector<8x32xf32> to vector<8xf32>
    %4 = vector.shape_cast %3 : vector<8xf32> to vector<8x1xf32>
    %5 = math.rsqrt %4 : vector<8x1xf32>
    %cst_3 = arith.constant dense<0.000000e+00> : vector<8x16xf32>
    %6 = tpu.matmul %0, %1, %cst_3 {dimension_numbers = #tpu.dot_dimension_numbers<[1], [1], [0], [0], [0, 0, 1, 0], [], []>} : vector<8x32xf32>, vector<16x32xf32>, vector<8x16xf32> -> vector<8x16xf32>
    %7 = vector.broadcast %5 : vector<8x1xf32> to vector<8x16xf32>
    %8 = arith.mulf %6, %7 : vector<8x16xf32>
    %cst_4 = arith.constant dense<0xFF800000> : vector<8xf32>
    %9 = vector.multi_reduction <maximumf>, %8, %cst_4 [1] : vector<8x16xf32> to vector<8xf32>
    %10 = vector.shape_cast %9 : vector<8xf32> to vector<8x1xf32>
    %11 = vector.broadcast %10 : vector<8x1xf32> to vector<8x16xf32>
    %12 = arith.subf %8, %11 : vector<8x16xf32>
    %13 = math.exp %12 : vector<8x16xf32>
    %cst_5 = arith.constant dense<0.000000e+00> : vector<8xf32>
    %14 = vector.multi_reduction <add>, %13, %cst_5 [1] : vector<8x16xf32> to vector<8xf32>
    %15 = vector.shape_cast %14 : vector<8xf32> to vector<8x1xf32>
    %16 = math.log %15 : vector<8x1xf32>
    %17 = arith.addf %10, %16 : vector<8x1xf32>
    %c0_6 = arith.constant 0 : index
    %c0_7 = arith.constant 0 : index
    %18 = vector.load %arg3[%c0_6, %c0_7] : memref<1x8xi32, #tpu.memory_space<vmem>>, vector<1x8xi32>
    %19 = tpu.transpose %18, [1, 0] : vector<1x8xi32> -> vector<8x1xi32>
    %20 = tpu.iota {dimensions = array<i32: 1>} : vector<8x16xi32>
    %21 = vector.broadcast %19 : vector<8x1xi32> to vector<8x16xi32>
    %22 = arith.cmpi eq, %20, %21 : vector<8x16xi32>
    %cst_8 = arith.constant 0.000000e+00 : f32
    %23 = vector.broadcast %cst_8 : f32 to vector<8x16xf32>
    %24 = arith.select %22, %8, %23 : vector<8x16xi1>, vector<8x16xf32>
    %cst_9 = arith.constant dense<0.000000e+00> : vector<8xf32>
    %25 = vector.multi_reduction <add>, %24, %cst_9 [1] : vector<8x16xf32> to vector<8xf32>
    %26 = vector.shape_cast %25 : vector<8xf32> to vector<8x1xf32>
    %27 = arith.subf %17, %26 : vector<8x1xf32>
    %28 = tpu.transpose %27, [1, 0] : vector<8x1xf32> -> vector<1x8xf32>
    %29 = tpu.iota {dimensions = array<i32: 1>} : vector<1x8xi32>
    %c8_i32 = arith.constant 8 : i32
    %30 = arith.muli %arg0, %c8_i32 : i32
    %31 = vector.broadcast %30 : i32 to vector<1x8xi32>
    %32 = arith.addi %31, %29 : vector<1x8xi32>
    %c8_i32_10 = arith.constant 8 : i32
    %33 = vector.broadcast %c8_i32_10 : i32 to vector<1x8xi32>
    %34 = arith.cmpi slt, %32, %33 : vector<1x8xi32>
    %cst_11 = arith.constant 0.000000e+00 : f32
    %35 = vector.broadcast %cst_11 : f32 to vector<1x8xf32>
    %36 = arith.select %34, %28, %35 : vector<1x8xi1>, vector<1x8xf32>
    %c0_12 = arith.constant 0 : index
    %c0_13 = arith.constant 0 : index
    %37 = vector.load %arg4[%c0_12, %c0_13] : memref<1x8xf32, #tpu.memory_space<vmem>>, vector<1x8xf32>
    tpu.vector_store %arg4[%c0_12, %c0_13], %36 {strides = array<i32>} : memref<1x8xf32, #tpu.memory_space<vmem>>, vector<1x8xf32>,
    return
  }
  func.func @transform_0(%arg0: i32) -> (i32, i32) {
    %c0_i32 = arith.constant 0 : i32
    %c0_i32_0 = arith.constant 0 : i32
    return %arg0, %c0_i32 : i32, i32
  }
  func.func @transform_1(%arg0: i32) -> (i32, i32) {
    %c0_i32 = arith.constant 0 : i32
    %c0_i32_0 = arith.constant 0 : i32
    %c0_i32_1 = arith.constant 0 : i32
    return %c0_i32, %c0_i32_0 : i32, i32
  }
  func.func @transform_2(%arg0: i32) -> (i32, i32) {
    %c0_i32 = arith.constant 0 : i32
    %c0_i32_0 = arith.constant 0 : i32
    return %c0_i32, %arg0 : i32, i32
  }
  func.func @transform_3(%arg0: i32) -> (i32, i32) {
    %c0_i32 = arith.constant 0 : i32
    %c0_i32_0 = arith.constant 0 : i32
    return %c0_i32, %arg0 : i32, i32
  }
}

</mosaic_0001>

<bundles_post_ra>
// kernel: tpu_custom_call.1
= control target key start
LH: loop header
LB: loop body
LE: loop exit
PB: predicated region body
PF: predicated region fallthrough
CT: control target
= control target key end

     0   :  { %8 = vsyncpa [#allocation3], 0  ;;  %s344_s0 = inlined_call_operand.hbm [shape: f32[8,32], index: 0, kind: input, shape index: {}]   ;;  %s345_s1 = inlined_call_operand.hbm [shape: f32[16,32], index: 1, kind: input, shape index: {}]   ;;  %s346_s2 = inlined_call_operand.vmem [shape: s32[1,8], index: 2, kind: input, shape index: {}]   ;;  %s347_s3 = inlined_call_operand.hbm [shape: f32[1,8], index: 3, kind: output, shape index: {}]  }
   0x1   :  { %9 = vsyncpa [#allocation6], 0 }
   0x2   :  { %10 = vsyncpa [#allocation4], 0  ;;  %s16_s14 = sshll.u32 %s344_s0, 4  ;;  %s303_s15 = smov [#allocation2]   ;;  %s17_s14 = int_to_ptr.hbm [resolvable:$true] %s16_s14 }
   0x3   :  { %s18_s16 = sshll.u32 %s303_s15, 4  ;;  %s26_s19 = sshll.u32 %s345_s1, 4  ;;  %s19_s16 = int_to_ptr.vmem [resolvable:$true] %s18_s16  ;;  %s27_s19 = int_to_ptr.hbm [resolvable:$true] %s26_s19 }
   0x4   :  { %21 = dma.hbm_to_vmem [thread:$0]  %s17_s14, 128, %s19_s16, [#allocation3]  }
   0x5   :  { %s304_s20 = smov [#allocation5]   ;;  %s305_s22 = smov 128  }
   0x6   :  { %s28_s21 = sshll.u32 %s304_s20, 4  ;;  %s306_s23 = smov 8   ;;  %s29_s21 = int_to_ptr.vmem [resolvable:$true] %s28_s21 }
   0x7   :  { %34 = dma.hbm_to_vmem [thread:$0]  %s27_s19, 256, %s29_s21, [#allocation6], %s305_s22, %s305_s22, %s306_s23  }
   0x8   :  { %297 = dma.done.wait [#allocation3], 128  }
   0x9   :  { %298 = vsyncadd [#allocation3], 4294967168 }
   0xa   :  { %299 = dma.done.wait [#allocation6], 256  }
   0xb   :  { %300 = vsyncadd [#allocation6], 4294967040  ;;  %v106_v0 = vld [vmem:[%s346_s2] sm:$0x1]  ;;  %vm49_vm0 = vcmask 261120   ;;  %v47_v2 = vld [vmem:[#allocation5 + $0x8] sm:$0xff]  ;;  %v139_v24 = vlaneseq }
   0xc   :  { %v45_v1 = vld [vmem:[#allocation2] sm:$0xff]  ;;  %107 = vxpose.xlu1.b32.start.end [1/1] (short) (narrow) %v106_v0, 8  ;;  %207 = vmatpush.xpose.msk.msra.mxu0 %vm49_vm0, %v47_v2  ;;  %v46_v4 = vld [vmem:[#allocation5] sm:$0xff]  ;;  %v307_v6 = vmov 0   ;;  %vm93_vm4 = vcmask 130048   ;;  %s308_s1 = smov [#allocation7]  }
   0xd   :  { %v48_v3 = vmul.f32 %v45_v1, %v45_v1  ;;  %v140_v25 = vand.u32 127, %v139_v24  ;;  %s194_s2 = sshll.u32 %s308_s1, 4  ;;  %s196_s27 = sshll.u32 %s347_s3, 4  ;;  %vm187_vm7 = vcmask 57344   ;;  %s195_s2 = int_to_ptr.vmem [resolvable:$true] %s194_s2  ;;  %s197_s27 = int_to_ptr.hbm [resolvable:$true] %s196_s27 }
   0xf   :  { %v50_v5 = vsel %vm49_vm0, %v48_v3, 0.0  ;;  %vm185_vm6 = vcmp.lt.s32.totalorder %v140_v25, 8 }
  0x10   :  { %51 = vadd.xlane.f32.xlu0 %v50_v5  ;;  %208 = vmatpush.xpose.msk.msra.mxu0 %vm49_vm0, %v46_v4 }
  0x13   :  { %209 = vmatmul.msk.f32.vlgmr.msra.gmra.mxu0 %vm49_vm0, %v45_v1 }
  0x5f   :  { %217 = vset.pattern.permute.xlu1 %v307_v6 }
  0x83   :  { %v52_v7 = vpop.xlane.xlu0 %51 }
  0x84   :  { %219 = vrsqrt.f32 %v52_v7  ;;  %vm59_vm2 = vweird.f32 %v52_v7 }
  0x8a   :  { %v220_v8 = vpop.eup %219 }
  0x8b   :  { %v54_v9 = vmul.f32 %v220_v8, %v52_v7  ;;  %vm60_vm1 = vweird.f32 %v220_v8 }
  0x8c   :  { %vm61_vm3 = vmor %vm59_vm2, %vm60_vm1 }
  0x8d   :  { %v55_v10 = vmul.f32 %v220_v8, %v54_v9 }
  0x8f   :  { %v56_v11 = vmul.f32 0.5, %v55_v10 }
  0x90   :  { %v89_v14 = vpop.f32.mrf.mxu0 }
  0x91   :  { %v57_v12 = vsub.f32 1.5, %v56_v11 }
  0x93   :  { %v58_v13 = vmul.f32 %v220_v8, %v57_v12 }
  0x95   :  { %v62_v15 = vsel %vm61_vm3, %v220_v8, %v58_v13 }
  0x96   :  { %v92_v16 = vmul.f32 %v89_v14, %v62_v15 }
  0x98   :  { %v94_v17 = vsel %vm93_vm4, %v92_v16, -inf }
  0x99   :  { %95 = vmax.xlane.f32.xlu0 %v94_v17 }
  0xb0   :  { %v123_v18 = vpop.trf.xlu1 }
  0xb1   :  { %142 = vperm.xlu1 %217, %v123_v18  }
 0x10c   :  { %v96_v19 = vpop.xlane.xlu0 %95 }
 0x10d   :  { %v97_v20 = vsub.f32 %v92_v16, %v96_v19 }
 0x10f   :  { %v98_v21 = vmul.f32 1.442695, %v97_v20 }
 0x111   :  { %221 = vpow2.f32 %v98_v21 }
 0x117   :  { %v222_v22 = vpop.eup %221 }
 0x118   :  { %v100_v23 = vsel %vm93_vm4, %v222_v22, 0.0 }
 0x119   :  { %101 = vadd.xlane.f32.xlu2 %v100_v23 }
 0x123   :  { %v143_v26 = vpop.permute.xlu1 %142 }
 0x124   :  { %vm144_vm5 = vcmp.eq.s32.totalorder %v140_v25, %v143_v26 }
 0x125   :  { %v145_v27 = vsel %vm144_vm5, %v92_v16, 0.0 }
 0x126   :  { %v146_v28 = vsel %vm93_vm4, %v145_v27, 0.0 }
 0x127   :  { %147 = vadd.xlane.f32.xlu2 %v146_v28 }
 0x18c   :  { %v102_v29 = vpop.xlane.xlu2 %101 }
 0x18d   :  { %223 = vlog2.f32 %v102_v29 }
 0x193   :  { %v224_v30 = vpop.eup %223 }
 0x194   :  { %v104_v31 = vmul.f32 0.6931472, %v224_v30 }
 0x196   :  { %v105_v32 = vadd.f32 %v104_v31, %v96_v19 }
 0x19a   :  { %v148_v33 = vpop.xlane.xlu2 %147 }
 0x19b   :  { %v149_v34 = vsub.f32 %v105_v32, %v148_v33 }
 0x19d   :  { %150 = vxpose.xlu0.b32.start.end [1/1] (short) (narrow) %v149_v34, 8 }
 0x204   :  { %218 = vset.pattern.permute.xlu0 %v307_v6 }
 0x241   :  { %v166_v35 = vpop.trf.xlu0 }
 0x242   :  { %v186_v36 = vsel %vm185_vm6, %v166_v35, 0.0 }
 0x243   :  { %188 = vst.msk [vmem:[#allocation7] sm:$0x1] %vm187_vm7, %v186_v36 }
 0x244   :  { %199 = dma.vmem_to_hbm [thread:$0]  %s195_s2, 16, %s197_s27, [#allocation4]  }
 0x245   :  { %301 = dma.done.wait [#allocation4], 16  }
 0x246   :  { %302 = vsyncadd [#allocation4], 4294967280 }
 0x247   :  { %204 = vsyncpa [#allocation3], 1 }
 0x248   :  { %205 = vsyncpa [#allocation6], 1 }
 0x249   :  { %206 = vsyncpa [#allocation4], 1 }

</bundles_post_ra>
